<compile_context>
chip_gen: v5e
topology: v5e:2x2
jax: 0.10.0
libtpu: 0.0.40
codegen_flags: <defaults>
</compile_context>

<pallas_src>
import functools
import math

import jax
import jax.numpy as jnp
from jax.experimental import pallas as pl
from jax.experimental.pallas import tpu as pltpu


def _round_up(x, m):
    return ((x + m - 1) // m) * m


def _mish_f32(y, *, approx_recip=True):
    """Mish(y) = y * tanh(softplus(y)).

    tanh(softplus(y)) = ((1+e^y)^2 - 1) / ((1+e^y)^2 + 1) = 1 - 2/((1+e^y)^2 + 1).
    One EUP exp + one reciprocal; no clamp/select: e^y overflowing to +inf
    drives the reciprocal to 0, i.e. tanh(softplus) saturates to 1 correctly.
    """
    t = jnp.exp(y)
    u = (1.0 + t) * (1.0 + t)
    return y * (1.0 - 2.0 * pl.reciprocal(u + 1.0, approx=approx_recip))


def _fused_mlp_kernel(x_ref, *refs, n_layers, approx_recip):
    """Fused [Linear -> Mish]*(L-1) -> Linear on one (TM, D_in) batch tile.

    refs = (w1, b1, w2, b2, ..., wL, bL, out).  Intermediate activations never
    leave VMEM/vregs; only the final lane-dense (TM, D_out_pad) tile is stored.
    """
    o_ref = refs[-1]
    wb = refs[:-1]

    h = x_ref[...]                                  # (TM, D_in), f32
    for i in range(n_layers):
        w = wb[2 * i][...]                          # (K_i, N_i) padded, MXU dtype
        b = wb[2 * i + 1][...]                      # (1, N_i), f32
        # Cast to the MXU dtype inside the kernel (hidden under the matmul);
        # accumulate in f32 on the MXU.
        y = jnp.dot(h.astype(w.dtype), w,
                    preferred_element_type=jnp.float32) + b
        if i < n_layers - 1:
            y = _mish_f32(y, approx_recip=approx_recip)   # elementwise in f32
        h = y
    o_ref[...] = h.astype(o_ref.dtype)


def prepare_params(params, *, feat_mult=128, use_bf16=True):
    """One-time pad + cast of the Linear parameters for the kernel.

    * Hidden / output feature dims are zero-padded to multiples of `feat_mult`
      (128; prefer 256 on v6e/v7x) -> lane-dense activations and results.
      Zero-padding is exact: padded weight rows/cols are zero and Mish(0)=0.
    * D_in (first layer's contraction dim) is kept at its native size so the
      forward wrapper never has to re-pad (extra HBM pass over) x.
    * Weights are cast to bf16 ONCE here (cached); biases stay f32.

    Returns (flat [w1, b1, ..., wL, bL] list, true D_out).
    """
    mxu_dtype = jnp.bfloat16 if use_bf16 else jnp.float32
    prepared = []
    in_pad = params[0][0].shape[0]                  # native D_in, no pad
    d_out = params[-1][0].shape[1]
    for (w, b) in params:
        din, dout = w.shape
        dout_pad = _round_up(dout, feat_mult)
        w_pad = jnp.zeros((in_pad, dout_pad), jnp.float32).at[:din, :dout].set(w)
        b_pad = jnp.zeros((1, dout_pad), jnp.float32).at[:, :dout].set(b)
        prepared.append(w_pad.astype(mxu_dtype))
        prepared.append(b_pad)
        in_pad = dout_pad                           # next layer's padded input dim
    return prepared, d_out


def conservnet_forward(x, prepared, d_out, *, block_m=512, approx_recip=True):
    """ConservNet.forward: whole MLP in a single pallas_call.

    x:        (B, D_in) float32, passed as-is (no wrapper cast / pad).
    prepared: flat [w1, b1, ..., wL, bL] from prepare_params (padded, cached).
    d_out:    true (unpadded) output width; padded columns are sliced off.
    """
    B, D_in = x.shape
    n_layers = len(prepared) // 2
    d_out_pad = prepared[-1].shape[1]

    # Batch tile: multiple of 8 (f32 sublane), capped at block_m, and sized so
    # the grid has >= 2 steps when B allows -> both v7x TensorCores get work.
    tm = max(8, min(block_m, _round_up(pl.cdiv(B, 2), 8)))
    grid = (pl.cdiv(B, tm),)        # ragged last tile: Pallas masks the store

    in_specs = [pl.BlockSpec((tm, D_in), lambda i: (i, 0))]
    for li in range(n_layers):
        w, b = prepared[2 * li], prepared[2 * li + 1]
        # Constant index_map -> weights/biases stay VMEM-resident across grid.
        # TODO(synk): on v7x (64 MiB VMEM/TC) with large production layer
        # widths, add pipeline_mode=pl.Buffered(1) on these constant blocks or
        # stream layer weights with pltpu.emit_pipeline instead.
        in_specs.append(pl.BlockSpec(w.shape, lambda i: (0, 0)))
        in_specs.append(pl.BlockSpec(b.shape, lambda i: (0, 0)))

    kernel = functools.partial(_fused_mlp_kernel, n_layers=n_layers,
                               approx_recip=approx_recip)
    out = pl.pallas_call(
        kernel,
        grid=grid,
        out_shape=jax.ShapeDtypeStruct((B, d_out_pad), jnp.float32),
        in_specs=in_specs,
        # Lane-dense output store (last dim padded to 128).
        out_specs=pl.BlockSpec((tm, d_out_pad), lambda i: (i, 0)),
        compiler_params=pltpu.CompilerParams(
            dimension_semantics=("parallel",),      # v7x: split batch tiles over 2 TCs
            vmem_limit_bytes=48 * 1024 * 1024),     # > v5e 16 MiB default, < v7x 64 MiB
    )(x, *prepared)
    return out[:, :d_out]


def init_conservnet_params(key, cfg_clf):
    """Xavier-normal(gain=sqrt(2)) weights, zero biases (PyTorch init)."""
    gain = math.sqrt(2.0)  # nn.init.calculate_gain('relu')
    params = []
    for fan_in, fan_out in zip(cfg_clf[:-1], cfg_clf[1:]):
        key, sub = jax.random.split(key)
        std = gain * math.sqrt(2.0 / (fan_in + fan_out))
        # PyTorch stores (out, in); generate that, transpose to (in, out).
        w_t = std * jax.random.normal(sub, (fan_out, fan_in), dtype=jnp.float32)
        params.append((jnp.transpose(w_t), jnp.zeros((1, fan_out), jnp.float32)))
    return params


def _reference_forward(x, params):
    """Pure-JAX f32 reference (matches PyTorch math: Linear + Mish)."""
    h = x
    for i, (w, b) in enumerate(params):
        h = h @ w + b
        if i < len(params) - 1:
            sp = jnp.logaddexp(h, 0.0)
            h = h * jnp.tanh(sp)
    return h


if __name__ == "__main__":
    # Small synthetic config consistent with the module:
    #   cfg_clf = [D_in, hidden, hidden, D_out]
    D_in, hidden, D_out = 16, 32, 1
    cfg_clf = [D_in, hidden, hidden, D_out]
    batch = 8

    key = jax.random.PRNGKey(0)
    key, kx = jax.random.split(key)
    x = jax.random.normal(kx, (batch, D_in), dtype=jnp.float32)
    params = init_conservnet_params(key, cfg_clf)
    ref = _reference_forward(x, params)

    # Fast path: bf16 MXU operands + approx EUP reciprocal in Mish.
    prep_bf16, d_out = prepare_params(params, use_bf16=True)
    out = jax.block_until_ready(conservnet_forward(x, prep_bf16, d_out))
    assert out.shape == (batch, D_out), out.shape
    assert jnp.all(jnp.isfinite(out)), "non-finite output"
    assert jnp.allclose(out, ref, atol=1e-1, rtol=1e-1), (
        float(jnp.max(jnp.abs(out - ref))))

    # Precise path: f32 weights + exact reciprocal (for applications where the
    # conserved-quantity output must closely match the f32 reference).
    prep_f32, _ = prepare_params(params, use_bf16=False)
    out_f32 = jax.block_until_ready(
        conservnet_forward(x, prep_f32, d_out, approx_recip=False))
    assert jnp.allclose(out_f32, ref, atol=1e-2, rtol=1e-2), (
        float(jnp.max(jnp.abs(out_f32 - ref))))

    print("KERNEL_OK")
</pallas_src>

<mosaic_0001>
module attributes {stable_mosaic.version = 11 : i64} {
  func.func @_fused_mlp_kernel(%arg0: i32, %arg1: memref<8x16xf32, #tpu.memory_space<vmem>>, %arg2: memref<16x128xbf16, #tpu.memory_space<vmem>>, %arg3: memref<1x128xf32, #tpu.memory_space<vmem>>, %arg4: memref<128x128xbf16, #tpu.memory_space<vmem>>, %arg5: memref<1x128xf32, #tpu.memory_space<vmem>>, %arg6: memref<128x128xbf16, #tpu.memory_space<vmem>>, %arg7: memref<1x128xf32, #tpu.memory_space<vmem>>, %arg8: memref<8x128xf32, #tpu.memory_space<vmem>>) attributes {dimension_semantics = [#tpu.dimension_semantics<parallel>], iteration_bounds = array<i64: 1>, scalar_prefetch = 0 : i64, scratch_operands = 0 : i64, tpu.core_type = #tpu.core_type<tc>, window_params = [{transform_indices = @transform_0, window_bounds = array<i64: 8, 16>}, {pipeline_mode = #tpu.pipeline_mode<synchronous>, transform_indices = @transform_1, window_bounds = array<i64: 16, 128>}, {pipeline_mode = #tpu.pipeline_mode<synchronous>, transform_indices = @transform_2, window_bounds = array<i64: 1, 128>}, {pipeline_mode = #tpu.pipeline_mode<synchronous>, transform_indices = @transform_3, window_bounds = array<i64: 128, 128>}, {pipeline_mode = #tpu.pipeline_mode<synchronous>, transform_indices = @transform_4, window_bounds = array<i64: 1, 128>}, {pipeline_mode = #tpu.pipeline_mode<synchronous>, transform_indices = @transform_5, window_bounds = array<i64: 128, 128>}, {pipeline_mode = #tpu.pipeline_mode<synchronous>, transform_indices = @transform_6, window_bounds = array<i64: 1, 128>}, {transform_indices = @transform_7, window_bounds = array<i64: 8, 128>}]} {
    %c0 = arith.constant 0 : index
    %c0_0 = arith.constant 0 : index
    %0 = vector.load %arg1[%c0, %c0_0] : memref<8x16xf32, #tpu.memory_space<vmem>>, vector<8x16xf32>
    %c0_1 = arith.constant 0 : index
    %c0_2 = arith.constant 0 : index
    %1 = vector.load %arg2[%c0_1, %c0_2] : memref<16x128xbf16, #tpu.memory_space<vmem>>, vector<16x128xbf16>
    %c0_3 = arith.constant 0 : index
    %c0_4 = arith.constant 0 : index
    %2 = vector.load %arg3[%c0_3, %c0_4] : memref<1x128xf32, #tpu.memory_space<vmem>>, vector<1x128xf32>
    %3 = arith.truncf %0 : vector<8x16xf32> to vector<8x16xbf16>
    %cst = arith.constant dense<0.000000e+00> : vector<8x128xf32>
    %4 = tpu.matmul %3, %1, %cst {dimension_numbers = #tpu.dot_dimension_numbers<[1], [0], [0], [1], [0, 0, 1, 1], [], []>} : vector<8x16xbf16>, vector<16x128xbf16>, vector<8x128xf32> -> vector<8x128xf32>
    %5 = vector.broadcast %2 : vector<1x128xf32> to vector<8x128xf32>
    %6 = arith.addf %4, %5 : vector<8x128xf32>
    %7 = math.exp %6 : vector<8x128xf32>
    %cst_5 = arith.constant 1.000000e+00 : f32
    %8 = vector.broadcast %cst_5 : f32 to vector<8x128xf32>
    %9 = arith.addf %8, %7 : vector<8x128xf32>
    %cst_6 = arith.constant 1.000000e+00 : f32
    %10 = vector.broadcast %cst_6 : f32 to vector<8x128xf32>
    %11 = arith.addf %10, %7 : vector<8x128xf32>
    %12 = arith.mulf %9, %11 : vector<8x128xf32>
    %cst_7 = arith.constant 1.000000e+00 : f32
    %13 = vector.broadcast %cst_7 : f32 to vector<8x128xf32>
    %14 = arith.addf %12, %13 : vector<8x128xf32>
    %15 = tpu.reciprocal %14 {approx = true} : vector<8x128xf32> -> vector<8x128xf32>
    %cst_8 = arith.constant 2.000000e+00 : f32
    %16 = vector.broadcast %cst_8 : f32 to vector<8x128xf32>
    %17 = arith.mulf %16, %15 : vector<8x128xf32>
    %cst_9 = arith.constant 1.000000e+00 : f32
    %18 = vector.broadcast %cst_9 : f32 to vector<8x128xf32>
    %19 = arith.subf %18, %17 : vector<8x128xf32>
    %20 = arith.mulf %6, %19 : vector<8x128xf32>
    %c0_10 = arith.constant 0 : index
    %c0_11 = arith.constant 0 : index
    %21 = vector.load %arg4[%c0_10, %c0_11] : memref<128x128xbf16, #tpu.memory_space<vmem>>, vector<128x128xbf16>
    %c0_12 = arith.constant 0 : index
    %c0_13 = arith.constant 0 : index
    %22 = vector.load %arg5[%c0_12, %c0_13] : memref<1x128xf32, #tpu.memory_space<vmem>>, vector<1x128xf32>
    %23 = arith.truncf %20 : vector<8x128xf32> to vector<8x128xbf16>
    %cst_14 = arith.constant dense<0.000000e+00> : vector<8x128xf32>
    %24 = tpu.matmul %23, %21, %cst_14 {dimension_numbers = #tpu.dot_dimension_numbers<[1], [0], [0], [1], [0, 0, 1, 1], [], []>} : vector<8x128xbf16>, vector<128x128xbf16>, vector<8x128xf32> -> vector<8x128xf32>
    %25 = vector.broadcast %22 : vector<1x128xf32> to vector<8x128xf32>
    %26 = arith.addf %24, %25 : vector<8x128xf32>
    %27 = math.exp %26 : vector<8x128xf32>
    %cst_15 = arith.constant 1.000000e+00 : f32
    %28 = vector.broadcast %cst_15 : f32 to vector<8x128xf32>
    %29 = arith.addf %28, %27 : vector<8x128xf32>
    %cst_16 = arith.constant 1.000000e+00 : f32
    %30 = vector.broadcast %cst_16 : f32 to vector<8x128xf32>
    %31 = arith.addf %30, %27 : vector<8x128xf32>
    %32 = arith.mulf %29, %31 : vector<8x128xf32>
    %cst_17 = arith.constant 1.000000e+00 : f32
    %33 = vector.broadcast %cst_17 : f32 to vector<8x128xf32>
    %34 = arith.addf %32, %33 : vector<8x128xf32>
    %35 = tpu.reciprocal %34 {approx = true} : vector<8x128xf32> -> vector<8x128xf32>
    %cst_18 = arith.constant 2.000000e+00 : f32
    %36 = vector.broadcast %cst_18 : f32 to vector<8x128xf32>
    %37 = arith.mulf %36, %35 : vector<8x128xf32>
    %cst_19 = arith.constant 1.000000e+00 : f32
    %38 = vector.broadcast %cst_19 : f32 to vector<8x128xf32>
    %39 = arith.subf %38, %37 : vector<8x128xf32>
    %40 = arith.mulf %26, %39 : vector<8x128xf32>
    %c0_20 = arith.constant 0 : index
    %c0_21 = arith.constant 0 : index
    %41 = vector.load %arg6[%c0_20, %c0_21] : memref<128x128xbf16, #tpu.memory_space<vmem>>, vector<128x128xbf16>
    %c0_22 = arith.constant 0 : index
    %c0_23 = arith.constant 0 : index
    %42 = vector.load %arg7[%c0_22, %c0_23] : memref<1x128xf32, #tpu.memory_space<vmem>>, vector<1x128xf32>
    %43 = arith.truncf %40 : vector<8x128xf32> to vector<8x128xbf16>
    %cst_24 = arith.constant dense<0.000000e+00> : vector<8x128xf32>
    %44 = tpu.matmul %43, %41, %cst_24 {dimension_numbers = #tpu.dot_dimension_numbers<[1], [0], [0], [1], [0, 0, 1, 1], [], []>} : vector<8x128xbf16>, vector<128x128xbf16>, vector<8x128xf32> -> vector<8x128xf32>
    %45 = vector.broadcast %42 : vector<1x128xf32> to vector<8x128xf32>
    %46 = arith.addf %44, %45 : vector<8x128xf32>
    %c0_25 = arith.constant 0 : index
    %c0_26 = arith.constant 0 : index
    %47 = vector.load %arg8[%c0_25, %c0_26] : memref<8x128xf32, #tpu.memory_space<vmem>>, vector<8x128xf32>
    tpu.vector_store %arg8[%c0_25, %c0_26], %46 {strides = array<i32>} : memref<8x128xf32, #tpu.memory_space<vmem>>, vector<8x128xf32>,
    return
  }
  func.func @transform_0(%arg0: i32) -> (i32, i32) {
    %c0_i32 = arith.constant 0 : i32
    %c0_i32_0 = arith.constant 0 : i32
    return %arg0, %c0_i32 : i32, i32
  }
  func.func @transform_1(%arg0: i32) -> (i32, i32) {
    %c0_i32 = arith.constant 0 : i32
    %c0_i32_0 = arith.constant 0 : i32
    %c0_i32_1 = arith.constant 0 : i32
    return %c0_i32, %c0_i32_0 : i32, i32
  }
  func.func @transform_2(%arg0: i32) -> (i32, i32) {
    %c0_i32 = arith.constant 0 : i32
    %c0_i32_0 = arith.constant 0 : i32
    %c0_i32_1 = arith.constant 0 : i32
    return %c0_i32, %c0_i32_0 : i32, i32
  }
  func.func @transform_3(%arg0: i32) -> (i32, i32) {
    %c0_i32 = arith.constant 0 : i32
    %c0_i32_0 = arith.constant 0 : i32
    %c0_i32_1 = arith.constant 0 : i32
    return %c0_i32, %c0_i32_0 : i32, i32
  }
  func.func @transform_4(%arg0: i32) -> (i32, i32) {
    %c0_i32 = arith.constant 0 : i32
    %c0_i32_0 = arith.constant 0 : i32
    %c0_i32_1 = arith.constant 0 : i32
    return %c0_i32, %c0_i32_0 : i32, i32
  }
  func.func @transform_5(%arg0: i32) -> (i32, i32) {
    %c0_i32 = arith.constant 0 : i32
    %c0_i32_0 = arith.constant 0 : i32
    %c0_i32_1 = arith.constant 0 : i32
    return %c0_i32, %c0_i32_0 : i32, i32
  }
  func.func @transform_6(%arg0: i32) -> (i32, i32) {
    %c0_i32 = arith.constant 0 : i32
    %c0_i32_0 = arith.constant 0 : i32
    %c0_i32_1 = arith.constant 0 : i32
    return %c0_i32, %c0_i32_0 : i32, i32
  }
  func.func @transform_7(%arg0: i32) -> (i32, i32) {
    %c0_i32 = arith.constant 0 : i32
    %c0_i32_0 = arith.constant 0 : i32
    return %arg0, %c0_i32 : i32, i32
  }
}

</mosaic_0001>

<bundles_post_ra>
// kernel: tpu_custom_call.1
= control target key start
LH: loop header
LB: loop body
LE: loop exit
PB: predicated region body
PF: predicated region fallthrough
CT: control target
= control target key end

     0   :  { %12 = vsyncpa [#allocation3], 0  ;;  %s625_s0 = inlined_call_operand.hbm [shape: f32[8,16], index: 0, kind: input, shape index: {}]   ;;  %s626_s1 = inlined_call_operand.hbm [shape: bf16[16,128], index: 1, kind: input, shape index: {}]   ;;  %s627_s2 = inlined_call_operand.vmem [shape: f32[1,128], index: 2, kind: input, shape index: {}]   ;;  %s628_s3 = inlined_call_operand.hbm [shape: bf16[128,128], index: 3, kind: input, shape index: {}]   ;;  %s629_s4 = inlined_call_operand.vmem [shape: f32[1,128], index: 4, kind: input, shape index: {}]   ;;  %s630_s5 = inlined_call_operand.hbm [shape: bf16[128,128], index: 5, kind: input, shape index: {}]   ;;  %s631_s6 = inlined_call_operand.vmem [shape: f32[1,128], index: 6, kind: input, shape index: {}]   ;;  %s632_s7 = inlined_call_operand.hbm [shape: f32[8,128], index: 7, kind: output, shape index: {}]  }
   0x1   :  { %13 = vsyncpa [#allocation6], 0 }
   0x2   :  { %14 = vsyncpa [#allocation9], 0  ;;  %s31_s26 = sshll.u32 %s626_s1, 4  ;;  %s32_s26 = int_to_ptr.hbm [resolvable:$true] %s31_s26 }
   0x3   :  { %15 = vsyncpa [#allocation4], 0  ;;  %s554_s27 = smov [#allocation5]   ;;  %s21_s8 = sshll.u32 %s625_s0, 4  ;;  %s22_s8 = int_to_ptr.hbm [resolvable:$true] %s21_s8 }
   0x4   :  { %s33_s28 = sshll.u32 %s554_s27, 4  ;;  %s555_s9 = smov 64   ;;  %s34_s28 = int_to_ptr.vmem [resolvable:$true] %s33_s28 }
   0x5   :  { %s556_s10 = smov 4   ;;  %s557_s11 = smov [#allocation2]  }
   0x6   :  { %39 = dma.hbm_to_vmem [thread:$0]  %s32_s26, 128, %s34_s28, [#allocation6], %s555_s9, %s555_s9, %s556_s10  }
   0x7   :  { %s23_s12 = sshll.u32 %s557_s11, 4  ;;  %s46_s15 = sshll.u32 %s628_s3, 4  ;;  %s24_s12 = int_to_ptr.vmem [resolvable:$true] %s23_s12  ;;  %s47_s15 = int_to_ptr.hbm [resolvable:$true] %s46_s15 }
   0x8   :  { %26 = dma.hbm_to_vmem [thread:$0]  %s22_s8, 128, %s24_s12, [#allocation3]  }
   0x9   :  { %s61_s17 = sshll.u32 %s630_s5, 4  ;;  %s558_s18 = smov [#allocation7]   ;;  %s62_s17 = int_to_ptr.hbm [resolvable:$true] %s61_s17 }
   0xa   :  { %s48_s19 = sshll.u32 %s558_s18, 4  ;;  %s559_s0 = smov [#allocation8]   ;;  %s49_s19 = int_to_ptr.vmem [resolvable:$true] %s48_s19 }
   0xb   :  { %54 = dma.hbm_to_vmem [thread:$0]  %s47_s15, 1024, %s49_s19, [#allocation6], %s555_s9, %s555_s9, %s556_s10  }
   0xc   :  { %s63_s20 = sshll.u32 %s559_s0, 4  ;;  %s64_s20 = int_to_ptr.vmem [resolvable:$true] %s63_s20 }
   0xd   :  { %69 = dma.hbm_to_vmem [thread:$0]  %s62_s17, 1024, %s64_s20, [#allocation9], %s555_s9, %s555_s9, %s556_s10  }
   0xe   :  { %546 = dma.done.wait [#allocation3], 128  }
   0xf   :  { %547 = vsyncadd [#allocation3], 4294967168 }
  0x10   :  { %548 = dma.done.wait [#allocation6], 1152  }
  0x11   :  { %549 = vsyncadd [#allocation6], 4294966144 }
  0x12   :  { %550 = dma.done.wait [#allocation9], 1024  }
  0x13   :  { %551 = vsyncadd [#allocation9], 4294966272  ;;  %v391_v0 = vld [vmem:[#allocation5] sm:$0xff]  ;;  %v89_v1 = vld [vmem:[#allocation2] sm:$0xff]  ;;  %vm103_vm0 = vcmask 130048   ;;  %s310_s27 = sshll.u32 %s632_s7, 4  ;;  %s311_s27 = int_to_ptr.hbm [resolvable:$true] %s310_s27 }
  0x14   :  { %v93_v2 = vpack.c.bf16 %v89_v1, %v89_v1  ;;  %114 = vmatpush.bf16.msra.mxu0 %v391_v0  ;;  %v399_v3 = vld [vmem:[#allocation7 + $0x38] sm:$0xff]  ;;  %v398_v4 = vld [vmem:[#allocation7 + $0x30] sm:$0xff]  ;;  %v397_v5 = vld [vmem:[#allocation7 + $0x28] sm:$0xff] }
  0x15   :  { %198 = vmatpush.bf16.msra.mxu1 %v399_v3  ;;  %v396_v6 = vld [vmem:[#allocation7 + $0x20] sm:$0xff]  ;;  %v395_v7 = vld [vmem:[#allocation7 + $0x18] sm:$0xff]  ;;  %v394_v8 = vld [vmem:[#allocation7 + $0x10] sm:$0xff] }
  0x16   :  { %v393_v9 = vld [vmem:[#allocation7 + $0x8] sm:$0xff]  ;;  %v392_v10 = vld [vmem:[#allocation7] sm:$0xff]  ;;  %v415_v11 = vld [vmem:[%s627_s2] ss:$0 sm:$0xff] }
  0x17   :  { %326 = vmatmul.msk.bf16.vlgmr.msra.gmra.mxu0 %vm103_vm0, %v93_v2  ;;  %v407_v25 = vld [vmem:[#allocation8 + $0x38] sm:$0xff]  ;;  %v406_v26 = vld [vmem:[#allocation8 + $0x30] sm:$0xff]  ;;  %v405_v27 = vld [vmem:[#allocation8 + $0x28] sm:$0xff] }
  0x18   :  { %289 = vmatpush.bf16.msra.mxu2 %v407_v25  ;;  %v404_v28 = vld [vmem:[#allocation8 + $0x20] sm:$0xff]  ;;  %v403_v29 = vld [vmem:[#allocation8 + $0x18] sm:$0xff]  ;;  %v402_v30 = vld [vmem:[#allocation8 + $0x10] sm:$0xff] }
  0x19   :  { %199 = vmatpush.bf16.msra.mxu1 %v398_v4  ;;  %v401_v31 = vld [vmem:[#allocation8 + $0x8] sm:$0xff]  ;;  %v400_v32 = vld [vmem:[#allocation8] sm:$0xff]  ;;  %v416_v33 = vld [vmem:[%s629_s4] ss:$0 sm:$0xff]  ;;  %s560_s4 = smov [#allocation10]  }
  0x1a   :  { %v417_v47 = vld [vmem:[%s631_s6] ss:$0 sm:$0xff]  ;;  %s308_s24 = sshll.u32 %s560_s4, 4  ;;  %s309_s24 = int_to_ptr.vmem [resolvable:$true] %s308_s24 }
  0x1c   :  { %290 = vmatpush.bf16.msra.mxu2 %v406_v26 }
  0x1d   :  { %200 = vmatpush.bf16.msra.mxu1 %v397_v5 }
  0x20   :  { %291 = vmatpush.bf16.msra.mxu2 %v405_v27 }
  0x21   :  { %201 = vmatpush.bf16.msra.mxu1 %v396_v6 }
  0x24   :  { %292 = vmatpush.bf16.msra.mxu2 %v404_v28 }
  0x25   :  { %202 = vmatpush.bf16.msra.mxu1 %v395_v7 }
  0x28   :  { %293 = vmatpush.bf16.msra.mxu2 %v403_v29 }
  0x29   :  { %203 = vmatpush.bf16.msra.mxu1 %v394_v8 }
  0x2c   :  { %294 = vmatpush.bf16.msra.mxu2 %v402_v30 }
  0x2d   :  { %204 = vmatpush.bf16.msra.mxu1 %v393_v9 }
  0x30   :  { %295 = vmatpush.bf16.msra.mxu2 %v401_v31 }
  0x31   :  { %205 = vmatpush.bf16.msra.mxu1 %v392_v10 }
  0x34   :  { %296 = vmatpush.bf16.msra.mxu2 %v400_v32 }
  0x94   :  { %v116_v12 = vpop.f32.mrf.mxu0 }
  0x95   :  { %v117_v13 = vadd.f32 %v415_v11, %v116_v12 }
  0x97   :  { %v120_v14 = vmul.f32 1.442695, %v117_v13 }
  0x99   :  { %418 = vpow2.f32 %v120_v14 }
  0x9c   :  { %v118_v15 = vpop.f32.mrf.mxu0 }
  0x9f   :  { %v419_v16 = vpop.eup %418 }
  0xa0   :  { %v122_v17 = vadd.f32 1.0, %v419_v16 }
  0xa2   :  { %v123_v18 = vmul.f32 %v122_v17, %v122_v17 }
  0xa4   :  { %v124_v19 = vadd.f32 1.0, %v123_v18 }
  0xa6   :  { %420 = vrcp.f32 %v124_v19 }
  0xac   :  { %v421_v20 = vpop.eup %420 }
  0xad   :  { %v126_v21 = vmul.f32 2.0, %v421_v20 }
  0xaf   :  { %v127_v22 = vsub.f32 1.0, %v126_v21 }
  0xb1   :  { %v128_v23 = vmul.f32 %v127_v22, %v117_v13 }
  0xb3   :  { %v146_v24 = vpack.c.bf16 %v128_v23, %v128_v23 }
  0xb5   :  { %206 = vmatmul.bf16.vlgmr.msra.gmra.mxu1 %v146_v24 }
 0x132   :  { %v207_v34 = vpop.f32.mrf.mxu1 }
 0x133   :  { %v208_v35 = vadd.f32 %v416_v33, %v207_v34 }
 0x135   :  { %v211_v36 = vmul.f32 1.442695, %v208_v35 }
 0x137   :  { %422 = vpow2.f32 %v211_v36 }
 0x13a   :  { %v209_v37 = vpop.f32.mrf.mxu1 }
 0x13d   :  { %v423_v38 = vpop.eup %422 }
 0x13e   :  { %v213_v39 = vadd.f32 1.0, %v423_v38 }
 0x140   :  { %v214_v40 = vmul.f32 %v213_v39, %v213_v39 }
 0x142   :  { %v215_v41 = vadd.f32 1.0, %v214_v40 }
 0x144   :  { %424 = vrcp.f32 %v215_v41 }
 0x14a   :  { %v425_v42 = vpop.eup %424 }
 0x14b   :  { %v217_v43 = vmul.f32 2.0, %v425_v42 }
 0x14d   :  { %v218_v44 = vsub.f32 1.0, %v217_v43 }
 0x14f   :  { %v219_v45 = vmul.f32 %v218_v44, %v208_v35 }
 0x151   :  { %v237_v46 = vpack.c.bf16 %v219_v45, %v219_v45 }
 0x153   :  { %297 = vmatmul.bf16.vlgmr.msra.gmra.mxu2 %v237_v46 }
 0x1d6   :  { %v298_v48 = vpop.f32.mrf.mxu2 }
 0x1d7   :  { %v299_v49 = vadd.f32 %v417_v47, %v298_v48 }
 0x1d9   :  { %302 = vst [vmem:[#allocation10] sm:$0xff] %v299_v49 }
 0x1da   :  { %313 = dma.vmem_to_hbm [thread:$0]  %s309_s24, 128, %s311_s27, [#allocation4]  }
 0x1de   :  { %v300_v50 = vpop.f32.mrf.mxu2 }
 0x1df   :  { %552 = dma.done.wait [#allocation4], 128  }
 0x1e0   :  { %553 = vsyncadd [#allocation4], 4294967168 }
 0x1e1   :  { %318 = vsyncpa [#allocation3], 1 }
 0x1e2   :  { %319 = vsyncpa [#allocation6], 1 }
 0x1e3   :  { %320 = vsyncpa [#allocation9], 1 }
 0x1e4   :  { %321 = vsyncpa [#allocation4], 1 }

</bundles_post_ra>
